<compile_context>
chip_gen: v7x
topology: tpu7x:2x2x1
jax: 0.10.0
libtpu: 0.0.40
codegen_flags: <defaults>
</compile_context>

<pallas_src>
import functools

import jax
import jax.numpy as jnp
from jax import lax
from jax.experimental import pallas as pl
from jax.experimental.pallas import tpu as pltpu


def _round_up(x, m):
    return ((x + m - 1) // m) * m


def _cdiv(a, b):
    return -(-a // b)


def _pick_tn(vocab, tn_max):
    """Largest lane-aligned vocab tile <= tn_max, preferring divisors of vocab
    so the resident output panel needs no padded columns (no slice copy)."""
    tn = min(tn_max, _round_up(vocab, 128))
    tn = max(128, (tn // 128) * 128)
    if vocab % tn != 0:
        for cand in range(tn, 127, -128):
            if vocab % cand == 0:
                return cand
    return tn


def generator_kernel(x_ref, w_ref, b_ref, o_ref, m_ref, l_ref, *,
                     vocab, tn, exp_in_bf16, w_transposed):
    # x_ref: (tm, d_model)            w_ref: (tn, d_model) or (d_model, tn)
    # b_ref: (1, tn) bias tile        o_ref: (tm, Vcover) resident row panel
    # m_ref/l_ref: (tm, 1) f32 running max / running sum-of-exp
    j = pl.program_id(1)
    nj = pl.num_programs(1)          # static python int

    @pl.when(j == 0)
    def _init():
        m_ref[...] = jnp.full_like(m_ref, -jnp.inf)
        l_ref[...] = jnp.zeros_like(l_ref)

    x = x_ref[...]
    w = w_ref[...]
    if x.dtype != jnp.bfloat16:      # cast in-kernel; no wrapper HBM copies
        x = x.astype(jnp.bfloat16)
    if w.dtype != jnp.bfloat16:
        w = w.astype(jnp.bfloat16)

    if w_transposed:                 # w: (d_model, tn)
        dims = (((1,), (0,)), ((), ()))
    else:                            # w: (tn, d_model), PyTorch nn.Linear layout
        dims = (((1,), (1,)), ((), ()))
    logits = lax.dot_general(x, w, dimension_numbers=dims,
                             preferred_element_type=jnp.float32)
    logits = logits + b_ref[...].astype(jnp.float32)          # (tm, tn) f32

    rem = vocab % tn                 # static
    if rem:
        # Ragged last vocab tile: the weight/bias reads past `vocab` are
        # garbage (unpadded inputs) -- mask those columns to a huge negative
        # so they drop out of the softmax.  (-1e30 is fine for f32/bf16
        # outputs; do not use an fp16 output dtype with this kernel.)
        col = j * tn + lax.broadcasted_iota(jnp.int32, logits.shape, 1)
        logits = jnp.where(col < vocab, logits, -1e30)

    # Online logsumexp update (all f32; optional bf16 exp for v6e's bf16 EUP).
    m_prev = m_ref[...]
    m_new = jnp.maximum(m_prev, jnp.max(logits, axis=-1, keepdims=True))
    z = logits - m_new
    if exp_in_bf16:
        p = jnp.exp(z.astype(jnp.bfloat16)).astype(jnp.float32)
    else:
        p = jnp.exp(z)
    l_ref[...] = (l_ref[...] * jnp.exp(m_prev - m_new)
                  + jnp.sum(p, axis=-1, keepdims=True))
    m_ref[...] = m_new

    # Stash raw logits into this row panel's vocab slab (panel is resident
    # across the whole j loop for this row tile).
    col0 = pl.multiple_of(j * tn, tn)
    o_ref[:, pl.ds(col0, tn)] = logits.astype(o_ref.dtype)

    @pl.when(j == nj - 1)
    def _finalize():
        lse = m_ref[...] + jnp.log(l_ref[...])                 # (tm, 1) f32
        # Chunked normalization: bounded vreg pressure, overlappable with the
        # panel writeback / next tile prefetch.
        def body(jj, carry):
            c = pl.multiple_of(jj * tn, tn)
            blk = o_ref[:, pl.ds(c, tn)].astype(jnp.float32)
            o_ref[:, pl.ds(c, tn)] = (blk - lse).astype(o_ref.dtype)
            return carry
        lax.fori_loop(0, nj, body, 0)


@functools.partial(jax.jit, static_argnames=("tm", "tn", "out_dtype",
                                             "exp_in_bf16",
                                             "weight_is_transposed"))
def generator_forward(x, weight, bias, *, tm=None, tn=512, out_dtype=None,
                      exp_in_bf16=False, weight_is_transposed=False):
    """log_softmax(x @ W.T + b, axis=-1).

    x: (batch, seq, d_model); weight: (vocab, d_model) [PyTorch layout] or
    (d_model, vocab) if weight_is_transposed; bias: (vocab,).
    For best HBM traffic store `weight` persistently in bfloat16.
    """
    batch, seq, d_model = x.shape
    vocab = weight.shape[1] if weight_is_transposed else weight.shape[0]
    out_dtype = jnp.dtype(x.dtype) if out_dtype is None else jnp.dtype(out_dtype)
    out_itemsize = out_dtype.itemsize

    M = batch * seq
    x2d = x.reshape(M, d_model)              # free (contiguous reshape)
    bias2d = bias.reshape(1, vocab)          # free

    # --- per-generation tile sizing -------------------------------------
    try:
        vmem_cap = int(pltpu.get_tpu_info().vmem_capacity_bytes)
    except Exception:                        # conservative (v7x-sized) default
        vmem_cap = 64 * 1024 * 1024
    budget = int(vmem_cap * 0.85)

    tn = _pick_tn(vocab, tn)
    ncover = _cdiv(vocab, tn)
    Vcover = ncover * tn                     # == vocab whenever tn | vocab

    if tm is None:
        tm = 512 if vmem_cap >= 100 * 1024 * 1024 else 256
    tm = max(8, min((tm // 8) * 8, _round_up(M, 8)))
    # Keep at least 2 row tiles when possible so both TensorCores (v7x
    # megacore) get a share of the "parallel" row axis.
    if M > 8 and _cdiv(M, tm) < 2:
        tm = max(8, _round_up(_cdiv(M, 2), 8))

    def _vmem_need(tm_):
        need = tm_ * Vcover * out_itemsize                       # panel (1 buffer)
        need += 2 * tm_ * d_model * x.dtype.itemsize             # x (2 buffers)
        need += 2 * tn * d_model * weight.dtype.itemsize         # W (2 buffers)
        need += 2 * tn * bias.dtype.itemsize                     # bias
        need += 4 * tm_ * 4                                      # m, l scratch
        return need + (1 << 20)                                  # slack

    # Shrink tm (never tn) until the single-buffered panel fits the budget.
    while tm > 8 and _vmem_need(tm) > budget:
        tm = max(8, ((tm // 2) // 8) * 8)

    need = _vmem_need(tm)
    vmem_limit = None
    if need > 16 * 1024 * 1024:
        vmem_limit = min(int(vmem_cap * 0.9),
                         max(need + need // 4, 32 * 1024 * 1024))

    grid = (_cdiv(M, tm), ncover)            # vocab (reduction) axis last

    if weight_is_transposed:
        w_spec = pl.BlockSpec((d_model, tn), lambda i, j: (0, j))
    else:
        w_spec = pl.BlockSpec((tn, d_model), lambda i, j: (j, 0))

    flops = 2 * M * d_model * Vcover
    bytes_accessed = (M * d_model * x.dtype.itemsize
                      + grid[0] * vocab * d_model * weight.dtype.itemsize
                      + grid[0] * vocab * bias.dtype.itemsize
                      + M * Vcover * out_itemsize)

    kernel = functools.partial(generator_kernel, vocab=vocab, tn=tn,
                               exp_in_bf16=exp_in_bf16,
                               w_transposed=weight_is_transposed)

    out2d = pl.pallas_call(
        kernel,
        out_shape=jax.ShapeDtypeStruct((M, Vcover), out_dtype),
        grid_spec=pltpu.PrefetchScalarGridSpec(
            num_scalar_prefetch=0,
            grid=grid,
            in_specs=[
                pl.BlockSpec((tm, d_model), lambda i, j: (i, 0)),   # x rows
                w_spec,                                             # W vocab tile
                pl.BlockSpec((1, tn), lambda i, j: (0, j)),         # bias tile
            ],
            # Resident full-vocab row panel; written back once per row tile,
            # so single-buffer it to halve the dominant VMEM consumer.
            out_specs=pl.BlockSpec((tm, Vcover), lambda i, j: (i, 0),
                                   pipeline_mode=pl.Buffered(1)),
            scratch_shapes=[
                pltpu.VMEM((tm, 1), jnp.float32),   # running max m
                pltpu.VMEM((tm, 1), jnp.float32),   # running sum-of-exp l
            ],
        ),
        compiler_params=pltpu.CompilerParams(
            dimension_semantics=("parallel", "arbitrary"),
            vmem_limit_bytes=vmem_limit,
        ),
        cost_estimate=pl.CostEstimate(
            flops=flops, transcendentals=M * Vcover,
            bytes_accessed=bytes_accessed),
    )(x2d, weight, bias2d)

    if Vcover != vocab:
        out2d = out2d[:, :vocab]
    return out2d.reshape(batch, seq, vocab)


def _reference(x, weight, bias):
    logits = jnp.einsum("bsd,vd->bsv", x, weight.astype(jnp.float32)) + bias
    return jax.nn.log_softmax(logits, axis=-1)


if __name__ == "__main__":
    # Small shapes consistent with the module's forward.
    batch, seq, d_model, vocab = 2, 8, 32, 128

    key = jax.random.PRNGKey(0)
    kx, kw, kb = jax.random.split(key, 3)

    # Deterministic init mirroring nn.Linear's uniform(-1/sqrt(fan_in), ...).
    bound = 1.0 / (d_model ** 0.5)
    weight_f32 = jax.random.uniform(kw, (vocab, d_model), jnp.float32, -bound, bound)
    bias = jax.random.uniform(kb, (vocab,), jnp.float32, -bound, bound)
    # Store the projection weight persistently in bf16 (perf review: avoids a
    # per-call astype/pad HBM copy; matmul operands are bf16 anyway).
    weight = weight_f32.astype(jnp.bfloat16)

    x = jax.random.normal(kx, (batch, seq, d_model), jnp.float32)

    out = generator_forward(x, weight, bias)
    out = jax.block_until_ready(out)
    assert out.shape == (batch, seq, vocab)

    # sanity 1: log_softmax rows exponentiate-sum to 1 (self-consistency)
    row_sums = jnp.sum(jnp.exp(out), axis=-1)
    assert bool(jnp.allclose(row_sums, 1.0, atol=1e-4))

    # sanity 2: matches the reference (tolerance covers bf16 matmul operands)
    ref = _reference(x, weight, bias)
    assert bool(jnp.allclose(out, ref, atol=2e-2, rtol=2e-2))

    print("KERNEL_OK")
</pallas_src>

<mosaic_0001>
module attributes {stable_mosaic.version = 11 : i64} {
  func.func @generator_kernel(%arg0: i32, %arg1: i32, %arg2: memref<8x32xf32, #tpu.memory_space<vmem>>, %arg3: memref<128x32xbf16, #tpu.memory_space<vmem>>, %arg4: memref<1x128xf32, #tpu.memory_space<vmem>>, %arg5: memref<8x128xf32, #tpu.memory_space<vmem>>, %arg6: memref<8x1xf32, #tpu.memory_space<vmem>>, %arg7: memref<8x1xf32, #tpu.memory_space<vmem>>) attributes {dimension_semantics = [#tpu.dimension_semantics<parallel>, #tpu.dimension_semantics<arbitrary>], iteration_bounds = array<i64: 2, 1>, scalar_prefetch = 0 : i64, scratch_operands = 2 : i64, tpu.core_type = #tpu.core_type<tc>, window_params = [{transform_indices = @transform_0, window_bounds = array<i64: 8, 32>}, {transform_indices = @transform_1, window_bounds = array<i64: 128, 32>}, {transform_indices = @transform_2, window_bounds = array<i64: 1, 128>}, {pipeline_mode = #tpu.pipeline_mode<synchronous>, transform_indices = @transform_3, window_bounds = array<i64: 8, 128>}]} {
    %c0_i32 = arith.constant 0 : i32
    %0 = arith.cmpi eq, %arg1, %c0_i32 : i32
    %1 = arith.extui %0 : i1 to i32
    %c0_i32_0 = arith.constant 0 : i32
    %2 = arith.cmpi ne, %1, %c0_i32_0 : i32
    scf.if %2 {
      %cst_19 = arith.constant 0xFF800000 : f32
      %33 = vector.broadcast %cst_19 : f32 to vector<8x1xf32>
      %c0_20 = arith.constant 0 : index
      %c0_21 = arith.constant 0 : index
      %34 = vector.load %arg6[%c0_20, %c0_21] : memref<8x1xf32, #tpu.memory_space<vmem>>, vector<8x1xf32>
      tpu.vector_store %arg6[%c0_20, %c0_21], %33 {strides = array<i32>} : memref<8x1xf32, #tpu.memory_space<vmem>>, vector<8x1xf32>,
      %cst_22 = arith.constant 0.000000e+00 : f32
      %35 = vector.broadcast %cst_22 : f32 to vector<8x1xf32>
      %c0_23 = arith.constant 0 : index
      %c0_24 = arith.constant 0 : index
      %36 = vector.load %arg7[%c0_23, %c0_24] : memref<8x1xf32, #tpu.memory_space<vmem>>, vector<8x1xf32>
      tpu.vector_store %arg7[%c0_23, %c0_24], %35 {strides = array<i32>} : memref<8x1xf32, #tpu.memory_space<vmem>>, vector<8x1xf32>,
    } else {
    }
    %c0 = arith.constant 0 : index
    %c0_1 = arith.constant 0 : index
    %3 = vector.load %arg2[%c0, %c0_1] : memref<8x32xf32, #tpu.memory_space<vmem>>, vector<8x32xf32>
    %c0_2 = arith.constant 0 : index
    %c0_3 = arith.constant 0 : index
    %4 = vector.load %arg3[%c0_2, %c0_3] : memref<128x32xbf16, #tpu.memory_space<vmem>>, vector<128x32xbf16>
    %5 = arith.truncf %3 : vector<8x32xf32> to vector<8x32xbf16>
    %cst = arith.constant dense<0.000000e+00> : vector<8x128xf32>
    %6 = tpu.matmul %5, %4, %cst {dimension_numbers = #tpu.dot_dimension_numbers<[1], [1], [0], [0], [0, 0, 1, 0], [], []>} : vector<8x32xbf16>, vector<128x32xbf16>, vector<8x128xf32> -> vector<8x128xf32>
    %c0_4 = arith.constant 0 : index
    %c0_5 = arith.constant 0 : index
    %7 = vector.load %arg4[%c0_4, %c0_5] : memref<1x128xf32, #tpu.memory_space<vmem>>, vector<1x128xf32>
    %8 = vector.broadcast %7 : vector<1x128xf32> to vector<8x128xf32>
    %9 = arith.addf %6, %8 : vector<8x128xf32>
    %c0_6 = arith.constant 0 : index
    %c0_7 = arith.constant 0 : index
    %10 = vector.load %arg6[%c0_6, %c0_7] : memref<8x1xf32, #tpu.memory_space<vmem>>, vector<8x1xf32>
    %cst_8 = arith.constant dense<0xFF800000> : vector<8xf32>
    %11 = vector.multi_reduction <maximumf>, %9, %cst_8 [1] : vector<8x128xf32> to vector<8xf32>
    %12 = vector.shape_cast %11 : vector<8xf32> to vector<8x1xf32>
    %13 = arith.maximumf %10, %12 : vector<8x1xf32>
    %14 = vector.broadcast %13 : vector<8x1xf32> to vector<8x128xf32>
    %15 = arith.subf %9, %14 : vector<8x128xf32>
    %16 = math.exp %15 : vector<8x128xf32>
    %c0_9 = arith.constant 0 : index
    %c0_10 = arith.constant 0 : index
    %17 = vector.load %arg7[%c0_9, %c0_10] : memref<8x1xf32, #tpu.memory_space<vmem>>, vector<8x1xf32>
    %18 = arith.subf %10, %13 : vector<8x1xf32>
    %19 = math.exp %18 : vector<8x1xf32>
    %20 = arith.mulf %17, %19 : vector<8x1xf32>
    %cst_11 = arith.constant dense<0.000000e+00> : vector<8xf32>
    %21 = vector.multi_reduction <add>, %16, %cst_11 [1] : vector<8x128xf32> to vector<8xf32>
    %22 = vector.shape_cast %21 : vector<8xf32> to vector<8x1xf32>
    %23 = arith.addf %20, %22 : vector<8x1xf32>
    %c0_12 = arith.constant 0 : index
    %c0_13 = arith.constant 0 : index
    %24 = vector.load %arg7[%c0_12, %c0_13] : memref<8x1xf32, #tpu.memory_space<vmem>>, vector<8x1xf32>
    tpu.vector_store %arg7[%c0_12, %c0_13], %23 {strides = array<i32>} : memref<8x1xf32, #tpu.memory_space<vmem>>, vector<8x1xf32>,
    %c0_14 = arith.constant 0 : index
    %c0_15 = arith.constant 0 : index
    %25 = vector.load %arg6[%c0_14, %c0_15] : memref<8x1xf32, #tpu.memory_space<vmem>>, vector<8x1xf32>
    tpu.vector_store %arg6[%c0_14, %c0_15], %13 {strides = array<i32>} : memref<8x1xf32, #tpu.memory_space<vmem>>, vector<8x1xf32>,
    %c128_i32 = arith.constant 128 : i32
    %26 = arith.muli %arg1, %c128_i32 : i32
    %27 = tpu.assume_multiple %26, 128 : i32
    %c0_16 = arith.constant 0 : index
    %28 = arith.index_cast %27 : i32 to index
    %29 = vector.load %arg5[%c0_16, %28] : memref<8x128xf32, #tpu.memory_space<vmem>>, vector<8x128xf32>
    tpu.vector_store %arg5[%c0_16, %28], %9 {strides = array<i32>} : memref<8x128xf32, #tpu.memory_space<vmem>>, vector<8x128xf32>,
    %c0_i32_17 = arith.constant 0 : i32
    %30 = arith.cmpi eq, %arg1, %c0_i32_17 : i32
    %31 = arith.extui %30 : i1 to i32
    %c0_i32_18 = arith.constant 0 : i32
    %32 = arith.cmpi ne, %31, %c0_i32_18 : i32
    scf.if %32 {
      %c0_19 = arith.constant 0 : index
      %c0_20 = arith.constant 0 : index
      %33 = vector.load %arg6[%c0_19, %c0_20] : memref<8x1xf32, #tpu.memory_space<vmem>>, vector<8x1xf32>
      %c0_21 = arith.constant 0 : index
      %c0_22 = arith.constant 0 : index
      %34 = vector.load %arg7[%c0_21, %c0_22] : memref<8x1xf32, #tpu.memory_space<vmem>>, vector<8x1xf32>
      %35 = math.log %34 : vector<8x1xf32>
      %36 = arith.addf %33, %35 : vector<8x1xf32>
      %c0_i32_23 = arith.constant 0 : i32
      %c128_i32_24 = arith.constant 128 : i32
      %37 = arith.muli %c0_i32_23, %c128_i32_24 : i32
      %38 = tpu.assume_multiple %37, 128 : i32
      %c0_25 = arith.constant 0 : index
      %39 = arith.index_cast %38 : i32 to index
      %40 = vector.load %arg5[%c0_25, %39] : memref<8x128xf32, #tpu.memory_space<vmem>>, vector<8x128xf32>
      %41 = vector.broadcast %36 : vector<8x1xf32> to vector<8x128xf32>
      %42 = arith.subf %40, %41 : vector<8x128xf32>
      %c0_26 = arith.constant 0 : index
      %43 = arith.index_cast %38 : i32 to index
      %44 = vector.load %arg5[%c0_26, %43] : memref<8x128xf32, #tpu.memory_space<vmem>>, vector<8x128xf32>
      tpu.vector_store %arg5[%c0_26, %43], %42 {strides = array<i32>} : memref<8x128xf32, #tpu.memory_space<vmem>>, vector<8x128xf32>,
      %c1_i32 = arith.constant 1 : i32
    } else {
    }
    return
  }
  func.func @transform_0(%arg0: i32, %arg1: i32) -> (i32, i32) {
    %c0_i32 = arith.constant 0 : i32
    %c0_i32_0 = arith.constant 0 : i32
    return %arg0, %c0_i32 : i32, i32
  }
  func.func @transform_1(%arg0: i32, %arg1: i32) -> (i32, i32) {
    %c0_i32 = arith.constant 0 : i32
    %c0_i32_0 = arith.constant 0 : i32
    return %arg1, %c0_i32 : i32, i32
  }
  func.func @transform_2(%arg0: i32, %arg1: i32) -> (i32, i32) {
    %c0_i32 = arith.constant 0 : i32
    %c0_i32_0 = arith.constant 0 : i32
    return %c0_i32, %arg1 : i32, i32
  }
  func.func @transform_3(%arg0: i32, %arg1: i32) -> (i32, i32) {
    %c0_i32 = arith.constant 0 : i32
    %c0_i32_0 = arith.constant 0 : i32
    return %arg0, %c0_i32 : i32, i32
  }
}

</mosaic_0001>

<bundles_post_ra>
// kernel: generator_forward.1
= control target key start
LH: loop header
LB: loop body
LE: loop exit
PB: predicated region body
PF: predicated region fallthrough
CT: control target
= control target key end

     0   :  { %8 = vsyncpa [#allocation5], 0  ;;  %s688_s12 = smov 0   ;;  %s690_s13 = smov 0   ;;  %s808_s0 = inlined_call_operand.vmem [shape: f32[16,32], index: 0, kind: input, shape index: {}]   ;;  %s809_s1 = inlined_call_operand.vmem [shape: bf16[128,32], index: 1, kind: input, shape index: {}]   ;;  %s810_s2 = inlined_call_operand.vmem [shape: f32[1,128], index: 2, kind: input, shape index: {}]   ;;  %s811_s3 = inlined_call_operand.hbm [shape: f32[16,128], index: 3, kind: output, shape index: {}]  }
   0x1   :  { %s692_s14 = smov 0   ;;  %s694_s15 = smov 0  }
   0x2   :  { %s696_s16 = smov 0  }
   0x3 LB: > { %s479_s17 = sadd.s32 4294967295, %s661_s16   ;;  %s26_s18 = sadd.s32 1, %s657_s15  ;;  %s661_s16 = sphi %s696_s16, %s14_s16   ;;  %s657_s15 = sphi %s694_s15, %s816_s15   ;;  %s653_s14 = sphi %s692_s14, %s815_s14   ;;  %s649_s13 = sphi %s690_s13, %s814_s13   ;;  %s645_s12 = sphi %s688_s12, %s813_s12  }
   0x4   : > { %p28_p0 = scmp.ge.s32.totalorder %s26_s18, 2  ;;  %s111_s19 = sadd.s32 1, %s649_s13 }
   0x5   : > { %p121_p1 = scmp.ne.s32.totalorder %s649_s13, %s645_s12  ;;  %p122_p2 = scmp.eq.s32.totalorder %s479_s17, 1 }
   0x6   : > { %s818_s18 = smov (%p28_p0, %s26_s18), 0  ;;  %p484_p4 = scmp.ge.s32.totalorder %s661_s16, 1 }
   0x7   : > { %p717_p3 = por %p122_p2, %p121_p1  ;;  %s108_s21 = ssub.s32 %s657_s15, %s818_s18 }
   0x8   : > { %p168_p5 = scmp.lt.s32.totalorder %s661_s16, 3  ;;  %p109_p6 = scmp.eq.s32.totalorder %s108_s21, 0 }
   0xa   : > { %p169_p7 = pnand %p484_p4, %p168_p5 }
   0xb   : > { %s726_s22 = scalar_select %p109_p6, %s649_s13, %s111_s19  }
   0xc   : > { %172 = sbr.rel (%p169_p7) target bundleno = 891 (0x37b), region = 32  ;;  %v577_v0 = vld [vmem:[%s809_s1] sm:$0xff] (!%p169_p7)   ;;  %v663_v1 = vmov (!%p169_p7), 0.0   ;;  %vm280_vm0 = vcmask (!%p169_p7), 261120   ;;  %v578_v3 = vld [vmem:[%s809_s1 + $0x8] sm:$0xff] (!%p169_p7)   ;;  %vm664_vm1 = vmmov (!%p169_p7), 0  }
   0xd   : > { %508 = vmatprep.subr.bf16.mxu0 (!%p169_p7), %v663_v1  ;;  %v285_v2 = vsel (!%p169_p7), %vm280_vm0, %v577_v0, 0  ;;  %v288_v4 = vsel (!%p169_p7), %vm280_vm0, %v578_v3, 0  ;;  %524 = vmatprep.mubr.msk.bf16.mxu0 (!%p169_p7), %vm664_vm1, %v663_v1  ;;  %v579_v5 = vld [vmem:[%s809_s1 + $0x10] sm:$0xff] (!%p169_p7)   ;;  %v580_v7 = vld [vmem:[%s809_s1 + $0x18] sm:$0xff] (!%p169_p7)   ;;  %v581_v9 = vld [vmem:[%s809_s1 + $0x20] sm:$0xff] (!%p169_p7)   ;;  %p194_p8 = scmp.lt.s32.totalorder (!%p169_p7), %s653_s14, 1 }
   0xe   : > { %509 = vmatpush3.bf16.xpose.msra.mxu0 (!%p169_p7), %v285_v2  ;;  %v291_v6 = vsel (!%p169_p7), %vm280_vm0, %v579_v5, 0  ;;  %v294_v8 = vsel (!%p169_p7), %vm280_vm0, %v580_v7, 0  ;;  %v297_v10 = vsel (!%p169_p7), %vm280_vm0, %v581_v9, 0  ;;  %v582_v11 = vld [vmem:[%s809_s1 + $0x28] sm:$0xff] (!%p169_p7)   ;;  %v583_v13 = vld [vmem:[%s809_s1 + $0x30] sm:$0xff] (!%p169_p7)   ;;  %v584_v15 = vld [vmem:[%s809_s1 + $0x38] sm:$0xff] (!%p169_p7)  }
   0xf   : > { %510 = vmatprep.subr.bf16.mxu0 (!%p169_p7), %v663_v1  ;;  %v300_v12 = vsel (!%p169_p7), %vm280_vm0, %v582_v11, 0  ;;  %v303_v14 = vsel (!%p169_p7), %vm280_vm0, %v583_v13, 0  ;;  %v306_v16 = vsel (!%p169_p7), %vm280_vm0, %v584_v15, 0  ;;  %vm212_vm2 = vcmask (!%p169_p7), 7168   ;;  %v486_v20 = vld [vmem:[%s810_s2] ss:$0 sm:$0xff] (!%p169_p7) }
  0x10   : > { %v665_v19 = vmov (!%p169_p7), -inf   ;;  %214 = vst.msk [vmem:[#allocation3] sm:$0xff] (!%p169_p7), %vm212_vm2, %v663_v1  ;;  %v666_v26 = vmov (!%p169_p7), 0   ;;  %s496_s26 = sshll.u32 (!%p169_p7), %s653_s14, 7  ;;  %s667_s27 = smov (!%p169_p7), [#allocation4]  }
  0x11   : > { %213 = vst.msk [vmem:[#allocation2] sm:$0xff] (!%p169_p7), %vm212_vm2, %v665_v19  ;;  %575 = vset.pattern.permute.xlu0 (!%p169_p7), %v666_v26  ;;  %576 = vset.pattern.permute.xlu1 (!%p169_p7), %v666_v26  ;;  %s401_s28 = sshll.u32 (!%p169_p7), %s667_s27, 4  ;;  %s399_s4 = scalar_lea.hbm (!%p169_p7), %s811_s3, %s496_s26  ;;  %s402_s28 = int_to_ptr.vmem [resolvable:$true] %s401_s28 }
  0x12   : > { %s591_s5 = scalar_lea.vmem (!%p169_p7), %s402_s28, 128  ;;  %p598_p12 = scmp.lt.s32.totalorder (!%p169_p7), %s402_s28, %s402_s28 }
  0x13   : > { %s195_s10 = scalar_select %p194_p8, %s653_s14, 1 }
  0x14   : > { %p592_p9 = scmp.ne.s32.totalorder %s402_s28, %s591_s5  ;;  %p599_p13 = scmp.lt.s32.totalorder %s591_s5, %s591_s5 }
  0x15   : > { %s485_s17 = sshll.u32 %s195_s10, 3 }
  0x16   : > { %511 = vmatpush3.bf16.xpose.msra.mxu0 %v288_v4  ;;  %s197_s23 = scalar_lea.vmem %s808_s0, %s485_s17  ;;  %p593_p10 = pnand %p592_p9, %p717_p3 }
  0x17   : > { %512 = vmatprep.subr.bf16.mxu0 %v663_v1  ;;  %v215_v17 = vld [vmem:[%s197_s23] sm:$0xff]  ;;  %v360_v37 = vld [vmem:[#allocation3] sm:$0xff]  ;;  %p600_p0 = por %p599_p13, %p598_p12 }
  0x18   : > { %v232_v18 = vpack.c.bf16 %v215_v17, %v215_v17  ;;  %v348_v27 = vld [vmem:[#allocation2] sm:$0xff]  ;;  %p594_p11 = pneg %p593_p10 }
  0x1a   : > { %p601_p1 = pnand %p600_p0, %p594_p11 }
  0x1e   : > { %513 = vmatpush3.bf16.xpose.msra.mxu0 %v291_v6 }
  0x1f   : > { %514 = vmatprep.subr.bf16.mxu0 %v663_v1 }
  0x26   : > { %515 = vmatpush3.bf16.xpose.msra.mxu0 %v294_v8 }
  0x27   : > { %516 = vmatprep.subr.bf16.mxu0 %v663_v1 }
  0x2e   : > { %517 = vmatpush3.bf16.xpose.msra.mxu0 %v297_v10 }
  0x2f   : > { %518 = vmatprep.subr.bf16.mxu0 %v663_v1 }
  0x36   : > { %519 = vmatpush3.bf16.xpose.msra.mxu0 %v300_v12 }
  0x37   : > { %520 = vmatprep.subr.bf16.mxu0 %v663_v1 }
  0x3e   : > { %521 = vmatpush3.bf16.xpose.msra.mxu0 %v303_v14 }
  0x3f   : > { %522 = vmatprep.subr.bf16.mxu0 %v663_v1 }
  0x46   : > { %523 = vmatpush3.bf16.xpose.msra.mxu0 %v306_v16 }
  0x4d   : > { %525 = vmatmul.mubr.msk.bf16.vlgmr.msra.gmra.mrb[0].mxu0 %vm280_vm0, %v232_v18 }
 0x120   : > { %v342_v21 = vpop.f32.mrb[0].mxu0 }
 0x121   : > { %v343_v22 = vadd.f32 %v486_v20, %v342_v21  ;;  %v526_v23 = vpop.f32.mrb[1].mxu0 }
 0x122   : > { %v345_v24 = vpop.f32.mrb[2].mxu0 }
 0x123   : > { %349 = vmax.xlane.f32.xlu0 %v343_v22  ;;  %v527_v25 = vpop.f32.mrb[3].mxu0 }
 0x1b0   : > { %v350_v28 = vpop.xlane.xlu0 %349 }
 0x1b1   : > { %v351_v29 = vmax.f32 %v348_v27, %v350_v28 }
 0x1b3   : > { %v361_v30 = vsub.f32 %v348_v27, %v351_v29  ;;  %370 = vst.msk [vmem:[#allocation2] sm:$0xff] %vm212_vm2, %v351_v29  ;;  %354 = vperm.xlu0 %575, %v351_v29  }
 0x1b5   : > { %v362_v35 = vmul.f32 1.442695, %v361_v30 }
 0x1ba   : > { %v379_v44 = vld [vmem:[#allocation2] sm:$0xff] }
 0x232   : > { %v355_v31 = vpop.permute.xlu0 %354 }
 0x233   : > { %v357_v32 = vsub.f32 %v343_v22, %v355_v31 }
 0x235   : > { %v358_v33 = vmul.f32 1.442695, %v357_v32 }
 0x237   : > { %585 = vpow2.f32 %v358_v33 }
 0x238   : > { %587 = vpow2.f32 %v362_v35 }
 0x241   : > { %v586_v34 = vpop.eup %585 }
 0x242   : > { %365 = vadd.xlane.f32.xlu1 %v586_v34  ;;  %v588_v36 = vpop.eup %587 }
 0x243   : > { %v364_v38 = vmul.f32 %v588_v36, %v360_v37 }
 0x2cf   : > { %v366_v39 = vpop.xlane.xlu1 %365 }
 0x2d0   : > { %v367_v40 = vadd.f32 %v366_v39, %v364_v38 }
 0x2d2   : > { %369 = vst.msk [vmem:[#allocation3] sm:$0xff] %vm212_vm2, %v367_v40 }
 0x2d9   : > { %v380_v41 = vld [vmem:[#allocation3] sm:$0xff] }
 0x2da   : > { %589 = vlog2.f32 %v380_v41 }
 0x2e4   : > { %v590_v42 = vpop.eup %589 }
 0x2e5   : > { %v382_v43 = vmul.f32 0.6931472, %v590_v42 }
 0x2e7   : > { %v383_v45 = vadd.f32 %v382_v43, %v379_v44 }
 0x2e9   : > { %387 = vperm.xlu1 %576, %v383_v45  }
 0x368   : > { %v388_v46 = vpop.permute.xlu1 %387 }
 0x369   : > { %v390_v47 = vsub.f32 %v343_v22, %v388_v46 }
 0x36b   : > { %391 = vst [vmem:[#allocation4] sm:$0xff] %v390_v47 }
 0x36c   : > { %604 = shalt.err (!%p601_p1)
}
 0x36d   : > { %s605_s14 = scalar_lea.hbm %s399_s4, 128  ;;  %s609_s8 = scalar_lea.hbm %s811_s3, 256 }
 0x36e   : > { %p606_p2 = scmp.ne.s32.totalorder %s399_s4, %s605_s14  ;;  %p610_p6 = scmp.lt.u32.totalorder %s399_s4, %s811_s3 }
 0x36f   : > { %p611_p7 = scmp.lt.u32.totalorder %s609_s8, %s605_s14  ;;  %p613_p9 = scmp.lt.u32.totalorder %s605_s14, %s399_s4 }
 0x370   : > { %p607_p4 = pnand %p606_p2, %p717_p3 }
 0x371   : > { %p612_p8 = por %p611_p7, %p610_p6 }
 0x372   : > { %p608_p5 = pneg %p607_p4 }
 0x373   : > { %p614_p10 = por %p613_p9, %p612_p8 }
 0x375   : > { %p615_p11 = pnand %p614_p10, %p608_p5 }
 0x377   : > { %618 = shalt.err (!%p615_p11)
}
 0x378   : > { %528 = dma.vmem_to_hbm [thread:$0]  (%p717_p3), %s402_s28, 128, %s399_s4, [#allocation5]  }
 0x379   : > { %640 = dma.done.wait (%p717_p3), [#allocation5], 128  }
 0x37a   : > { %642 = vsyncadd (%p717_p3), [#allocation5], 4294967168 }
 0x37b PF: > { %s14_s16 = sadd.s32 1, %s661_s16   ;;  %s813_s12 = smov %s649_s13 }
 0x37c   : > { %p11_p12 = scmp.ge.s32.totalorder %s14_s16, 4   ;;  %s814_s13 = smov %s726_s22 }
 0x37d   : > { %s815_s14 = smov %s657_s15  ;;  %s816_s15 = smov %s818_s18 }
 0x37e   :  { %13 = sbr.rel (!%p11_p12) target bundleno = 3 (0x3), region = 75 }
 0x385   :  { %414 = vsyncpa [#allocation5], 1 }
 0x386   :  { %416 = vsyncpa [#allocation5 + $0x1], 1 }

</bundles_post_ra>
